<compile_context>
chip_gen: v5e
topology: v5e:2x2
jax: 0.10.0
libtpu: 0.0.40
codegen_flags: <defaults>
</compile_context>

<pallas_src>
import functools

import jax
import jax.numpy as jnp
from jax.experimental import pallas as pl
from jax.experimental.pallas import tpu as pltpu


# ---------------------------------------------------------------------------
# Kernel
# ---------------------------------------------------------------------------
def _ffn_kernel(x_ref, w1_ref, b1_ref, w2_ref, b2_ref, o_ref, acc_ref, *, t_h):
    j = pl.program_id(1)

    @pl.when(j == 0)
    def _init():
        # Fold the second bias into the accumulator init (removes a full
        # (t_rows, E) VPU add at the end).
        acc_ref[...] = jnp.broadcast_to(
            b2_ref[...].astype(jnp.float32), acc_ref.shape)

    # First linear, partial over this H tile; f32 accumulation on the MXU.
    h = jnp.dot(x_ref[...], w1_ref[...], preferred_element_type=jnp.float32)
    # b1 is resident (full H_pad row); slice the current H tile in-kernel.
    b1 = b1_ref[:, pl.ds(pl.multiple_of(j * t_h, 128), t_h)]
    h = h + b1.astype(jnp.float32)

    # GELU, tanh approximation (matches torch.nn.GELU(approximate='tanh')),
    # in f32 (v5e has no bf16 VPU/EUP).  Refactored: inner = h*(c + c2*h*h).
    c = 0.7978845608028654          # sqrt(2/pi)
    c2 = c * 0.044715
    t = jnp.tanh(h * (c + c2 * (h * h)))
    hg = (0.5 * h * (1.0 + t)).astype(w2_ref.dtype)  # single cast, short live range

    # Second linear: accumulate this H tile's contribution in f32.
    acc_ref[...] += jnp.dot(hg, w2_ref[...], preferred_element_type=jnp.float32)

    @pl.when(j == pl.num_programs(1) - 1)
    def _store():
        o_ref[...] = acc_ref[...].astype(o_ref.dtype)


# ---------------------------------------------------------------------------
# Host-side helpers (static tile selection)
# ---------------------------------------------------------------------------
def _round_up(n, m):
    return ((n + m - 1) // m) * m


def _pad2(a, r, c):
    pr, pc = r - a.shape[0], c - a.shape[1]
    if pr == 0 and pc == 0:
        return a
    return jnp.pad(a, ((0, pr), (0, pc)))


def _tpu_generation_and_vmem():
    """Best-effort (generation, per-core VMEM bytes); conservative fallback."""
    gen, vmem = 6, None
    try:
        kind = jax.devices()[0].device_kind.lower()
        if "v5" in kind:
            gen = 5
        elif "v6" in kind:
            gen = 6
        elif "7" in kind:
            gen = 7
    except Exception:
        pass
    try:
        vmem = int(pltpu.get_tpu_info().vmem_capacity_bytes)
    except Exception:
        vmem = None
    if vmem is None or vmem <= 0:
        vmem = (64 << 20) if gen >= 7 else (128 << 20)
    return gen, vmem


def _footprint_bytes(t_rows, t_h, e_pad, h_pad, cbytes, obytes):
    return (
        2 * t_rows * e_pad * cbytes        # x tile (double-buffered)
        + 2 * e_pad * t_h * cbytes         # W1 tile
        + 2 * t_h * e_pad * cbytes         # W2 tile
        + 2 * h_pad * 4 + 2 * e_pad * 4    # b1 (full, resident) + b2
        + 2 * t_rows * e_pad * obytes      # out tile
        + t_rows * e_pad * 4               # f32 accumulator scratch
        + 3 * t_rows * t_h * 4             # f32 GELU temporaries
    )


def _select_tiles(rows, E, H, cbytes, obytes, tile_rows, tile_h, gen, vmem_cap):
    e_pad = _round_up(E, 128)
    h128 = _round_up(H, 128)
    budget = int(vmem_cap * 0.70)

    # --- row tile: per-generation roofline targets (weight-stream crossover) ---
    if tile_rows is None:
        target_rows = {5: 384, 6: 1024, 7: 512}.get(gen, 512)
    else:
        target_rows = _round_up(tile_rows, 8)
    t_rows = min(target_rows, _round_up(rows, 8))
    # v7x: make sure the "parallel" row axis has >= 2 steps so both TCs work.
    if gen >= 7:
        while t_rows > 8 and -(-rows // t_rows) < 2:
            t_rows = max(8, _round_up(t_rows // 2, 8))

    # --- hidden tile: resident weights fast path, otherwise 512-wide stream ---
    if tile_h is None:
        t_h = min(512, h128)
        full_w_bytes = 2 * 2 * e_pad * h128 * cbytes  # W1+W2, double-buffered
        if full_w_bytes <= budget // 3:
            t_h = h128                                 # weights DMA'd exactly once
    else:
        t_h = min(_round_up(tile_h, 128), h128)
    h_pad = _round_up(H, t_h)

    # --- shrink until the double-buffered footprint fits the VMEM budget ---
    while _footprint_bytes(t_rows, t_h, e_pad, h_pad, cbytes, obytes) > budget:
        if t_h > 128:
            t_h = max(128, _round_up(t_h // 2, 128))
            h_pad = _round_up(H, t_h)
        elif t_rows > 8:
            t_rows = max(8, _round_up(t_rows // 2, 8))
        else:
            break

    rows_pad = _round_up(rows, t_rows)
    footprint = _footprint_bytes(t_rows, t_h, e_pad, h_pad, cbytes, obytes)
    vmem_limit = int(min(max(32 << 20, footprint + (8 << 20)),
                         int(vmem_cap * 0.85)))
    vmem_limit = max(vmem_limit, footprint)  # never below the estimate
    return t_rows, t_h, e_pad, h_pad, rows_pad, vmem_limit


# ---------------------------------------------------------------------------
# Jitted implementation (tiling is static)
# ---------------------------------------------------------------------------
@functools.partial(
    jax.jit,
    static_argnames=("t_rows", "t_h", "e_pad", "h_pad", "rows_pad",
                     "vmem_limit", "compute_dtype"))
def _feed_forward_impl(x, w1, b1, w2, b2, *, t_rows, t_h, e_pad, h_pad,
                       rows_pad, vmem_limit, compute_dtype):
    B, T, E = x.shape
    H = w1.shape[1]
    out_dtype = x.dtype
    rows = B * T

    # Lane-dense zero padding (padded b1 columns are zero so GELU(0)=0 keeps the
    # H reduction clean; padded W2 rows/cols and b2 are zero; padded rows are
    # sliced off at the end).
    x2d = _pad2(x.reshape(rows, E), rows_pad, e_pad).astype(compute_dtype)
    w1p = _pad2(w1, e_pad, h_pad).astype(compute_dtype)
    w2p = _pad2(w2, h_pad, e_pad).astype(compute_dtype)
    b1p = _pad2(b1.reshape(1, H), 1, h_pad).astype(jnp.float32)
    b2p = _pad2(b2.reshape(1, E), 1, e_pad).astype(jnp.float32)

    grid = (rows_pad // t_rows, h_pad // t_h)

    out2d = pl.pallas_call(
        functools.partial(_ffn_kernel, t_h=t_h),
        out_shape=jax.ShapeDtypeStruct((rows_pad, e_pad), out_dtype),
        grid_spec=pltpu.PrefetchScalarGridSpec(
            num_scalar_prefetch=0,
            grid=grid,
            in_specs=[
                pl.BlockSpec((t_rows, e_pad), lambda i, j: (i, 0)),  # x row tile
                pl.BlockSpec((e_pad, t_h), lambda i, j: (0, j)),     # W1 H-tile
                pl.BlockSpec((1, h_pad), lambda i, j: (0, 0)),       # b1 (resident)
                pl.BlockSpec((t_h, e_pad), lambda i, j: (j, 0)),     # W2 H-tile
                pl.BlockSpec((1, e_pad), lambda i, j: (0, 0)),       # b2 (resident)
            ],
            out_specs=pl.BlockSpec((t_rows, e_pad), lambda i, j: (i, 0)),
            scratch_shapes=[pltpu.VMEM((t_rows, e_pad), jnp.float32)],
        ),
        compiler_params=pltpu.CompilerParams(
            dimension_semantics=("parallel", "arbitrary"),
            vmem_limit_bytes=vmem_limit,
        ),
    )(x2d, w1p, b1p, w2p, b2p)

    return out2d[:rows, :E].reshape(B, T, E)


def feed_forward(x, w1, b1, w2, b2, *, tile_rows=None, tile_h=None,
                 compute_dtype=jnp.bfloat16):
    """x: (B, T, E). w1: (E, H), b1: (H,), w2: (H, E), b2: (E,). Returns (B, T, E)."""
    B, T, E = x.shape
    H = w1.shape[1]
    assert w1.shape == (E, H) and w2.shape == (H, E)
    assert b1.shape == (H,) and b2.shape == (E,)

    rows = B * T
    cbytes = jnp.dtype(compute_dtype).itemsize
    obytes = jnp.dtype(x.dtype).itemsize

    gen, vmem_cap = _tpu_generation_and_vmem()
    t_rows, t_h, e_pad, h_pad, rows_pad, vmem_limit = _select_tiles(
        rows, E, H, cbytes, obytes, tile_rows, tile_h, gen, vmem_cap)

    return _feed_forward_impl(
        x, w1, b1, w2, b2,
        t_rows=t_rows, t_h=t_h, e_pad=e_pad, h_pad=h_pad, rows_pad=rows_pad,
        vmem_limit=vmem_limit, compute_dtype=compute_dtype)


# ---------------------------------------------------------------------------
# Reference + test
# ---------------------------------------------------------------------------
def _ref_feed_forward(x2d, w1, b1, w2, b2):
    h = x2d @ w1 + b1
    c = 0.7978845608028654
    h = 0.5 * h * (1.0 + jnp.tanh(c * (h + 0.044715 * h ** 3)))
    return h @ w2 + b2


if __name__ == "__main__":
    # Small shapes consistent with the module's forward: (batch, seq, embed).
    B, T, E = 2, 8, 32
    scaling_factor = 4
    H = scaling_factor * E

    key = jax.random.PRNGKey(0)
    kx, kw1, kb1, kw2, kb2 = jax.random.split(key, 5)

    x = jax.random.normal(kx, (B, T, E), dtype=jnp.float32)
    s1 = 1.0 / (E ** 0.5)
    s2 = 1.0 / (H ** 0.5)
    w1 = jax.random.uniform(kw1, (E, H), jnp.float32, -s1, s1)
    b1 = jax.random.uniform(kb1, (H,), jnp.float32, -s1, s1)
    w2 = jax.random.uniform(kw2, (H, E), jnp.float32, -s2, s2)
    b2 = jax.random.uniform(kb2, (E,), jnp.float32, -s2, s2)

    ref = _ref_feed_forward(x.reshape(-1, E), w1, b1, w2, b2).reshape(B, T, E)

    # Exact-precision path (f32 operands, f32 accumulation) for correctness.
    out_f32 = feed_forward(x, w1, b1, w2, b2, compute_dtype=jnp.float32)
    out_f32 = jax.block_until_ready(out_f32)
    assert out_f32.shape == (B, T, E)
    assert jnp.allclose(out_f32, ref, atol=1e-4, rtol=1e-4)

    # Default fast path (bf16 operands on the MXU, f32 accumulation).
    out_bf16 = feed_forward(x, w1, b1, w2, b2)
    out_bf16 = jax.block_until_ready(out_bf16)
    assert out_bf16.shape == (B, T, E)
    assert bool(jnp.all(jnp.isfinite(out_bf16)))
    assert jnp.allclose(out_bf16, ref, atol=2e-1, rtol=2e-1)

    # Exercise the multi-step reduction path (t_h < H_pad) explicitly.
    out_tiled = feed_forward(x, w1, b1, w2, b2, tile_rows=8, tile_h=128,
                             compute_dtype=jnp.float32)
    out_tiled = jax.block_until_ready(out_tiled)
    assert jnp.allclose(out_tiled, ref, atol=1e-4, rtol=1e-4)

    print("KERNEL_OK")
</pallas_src>

<mosaic_0001>
module attributes {stable_mosaic.version = 11 : i64} {
  func.func @_ffn_kernel(%arg0: i32, %arg1: i32, %arg2: memref<16x128xf32, #tpu.memory_space<vmem>>, %arg3: memref<128x128xf32, #tpu.memory_space<vmem>>, %arg4: memref<1x128xf32, #tpu.memory_space<vmem>>, %arg5: memref<128x128xf32, #tpu.memory_space<vmem>>, %arg6: memref<1x128xf32, #tpu.memory_space<vmem>>, %arg7: memref<16x128xf32, #tpu.memory_space<vmem>>, %arg8: memref<16x128xf32, #tpu.memory_space<vmem>>) attributes {dimension_semantics = [#tpu.dimension_semantics<parallel>, #tpu.dimension_semantics<arbitrary>], iteration_bounds = array<i64: 1, 1>, scalar_prefetch = 0 : i64, scratch_operands = 1 : i64, tpu.core_type = #tpu.core_type<tc>, window_params = [{transform_indices = @transform_0, window_bounds = array<i64: 16, 128>}, {transform_indices = @transform_1, window_bounds = array<i64: 128, 128>}, {pipeline_mode = #tpu.pipeline_mode<synchronous>, transform_indices = @transform_2, window_bounds = array<i64: 1, 128>}, {transform_indices = @transform_3, window_bounds = array<i64: 128, 128>}, {pipeline_mode = #tpu.pipeline_mode<synchronous>, transform_indices = @transform_4, window_bounds = array<i64: 1, 128>}, {transform_indices = @transform_5, window_bounds = array<i64: 16, 128>}]} {
    %c0_i32 = arith.constant 0 : i32
    %0 = arith.cmpi eq, %arg1, %c0_i32 : i32
    %1 = arith.extui %0 : i1 to i32
    %c0_i32_0 = arith.constant 0 : i32
    %2 = arith.cmpi ne, %1, %c0_i32_0 : i32
    scf.if %2 {
      %c0_18 = arith.constant 0 : index
      %c0_19 = arith.constant 0 : index
      %32 = vector.load %arg6[%c0_18, %c0_19] : memref<1x128xf32, #tpu.memory_space<vmem>>, vector<1x128xf32>
      %33 = vector.shape_cast %32 : vector<1x128xf32> to vector<1x128xf32>
      %34 = vector.broadcast %33 : vector<1x128xf32> to vector<16x128xf32>
      %c0_20 = arith.constant 0 : index
      %c0_21 = arith.constant 0 : index
      %35 = vector.load %arg8[%c0_20, %c0_21] : memref<16x128xf32, #tpu.memory_space<vmem>>, vector<16x128xf32>
      tpu.vector_store %arg8[%c0_20, %c0_21], %34 {strides = array<i32>} : memref<16x128xf32, #tpu.memory_space<vmem>>, vector<16x128xf32>,
    } else {
    }
    %c0 = arith.constant 0 : index
    %c0_1 = arith.constant 0 : index
    %3 = vector.load %arg2[%c0, %c0_1] : memref<16x128xf32, #tpu.memory_space<vmem>>, vector<16x128xf32>
    %c0_2 = arith.constant 0 : index
    %c0_3 = arith.constant 0 : index
    %4 = vector.load %arg3[%c0_2, %c0_3] : memref<128x128xf32, #tpu.memory_space<vmem>>, vector<128x128xf32>
    %cst = arith.constant dense<0.000000e+00> : vector<16x128xf32>
    %5 = tpu.matmul %3, %4, %cst {dimension_numbers = #tpu.dot_dimension_numbers<[1], [0], [0], [1], [0, 0, 1, 1], [], []>} : vector<16x128xf32>, vector<128x128xf32>, vector<16x128xf32> -> vector<16x128xf32>
    %c128_i32 = arith.constant 128 : i32
    %6 = arith.muli %arg1, %c128_i32 : i32
    %7 = tpu.assume_multiple %6, 128 : i32
    %c0_4 = arith.constant 0 : index
    %8 = arith.index_cast %7 : i32 to index
    %9 = vector.load %arg4[%c0_4, %8] : memref<1x128xf32, #tpu.memory_space<vmem>>, vector<1x128xf32>
    %10 = vector.broadcast %9 : vector<1x128xf32> to vector<16x128xf32>
    %11 = arith.addf %5, %10 : vector<16x128xf32>
    %12 = arith.mulf %11, %11 : vector<16x128xf32>
    %cst_5 = arith.constant 0.0356774069 : f32
    %13 = vector.broadcast %cst_5 : f32 to vector<16x128xf32>
    %14 = arith.mulf %13, %12 : vector<16x128xf32>
    %cst_6 = arith.constant 0.797884583 : f32
    %15 = vector.broadcast %cst_6 : f32 to vector<16x128xf32>
    %16 = arith.addf %15, %14 : vector<16x128xf32>
    %17 = arith.mulf %11, %16 : vector<16x128xf32>
    %18 = math.tanh %17 : vector<16x128xf32>
    %cst_7 = arith.constant 5.000000e-01 : f32
    %19 = vector.broadcast %cst_7 : f32 to vector<16x128xf32>
    %20 = arith.mulf %19, %11 : vector<16x128xf32>
    %cst_8 = arith.constant 1.000000e+00 : f32
    %21 = vector.broadcast %cst_8 : f32 to vector<16x128xf32>
    %22 = arith.addf %21, %18 : vector<16x128xf32>
    %23 = arith.mulf %20, %22 : vector<16x128xf32>
    %c0_9 = arith.constant 0 : index
    %c0_10 = arith.constant 0 : index
    %24 = vector.load %arg8[%c0_9, %c0_10] : memref<16x128xf32, #tpu.memory_space<vmem>>, vector<16x128xf32>
    %c0_11 = arith.constant 0 : index
    %c0_12 = arith.constant 0 : index
    %25 = vector.load %arg5[%c0_11, %c0_12] : memref<128x128xf32, #tpu.memory_space<vmem>>, vector<128x128xf32>
    %cst_13 = arith.constant dense<0.000000e+00> : vector<16x128xf32>
    %26 = tpu.matmul %23, %25, %cst_13 {dimension_numbers = #tpu.dot_dimension_numbers<[1], [0], [0], [1], [0, 0, 1, 1], [], []>} : vector<16x128xf32>, vector<128x128xf32>, vector<16x128xf32> -> vector<16x128xf32>
    %27 = arith.addf %24, %26 : vector<16x128xf32>
    %c0_14 = arith.constant 0 : index
    %c0_15 = arith.constant 0 : index
    %28 = vector.load %arg8[%c0_14, %c0_15] : memref<16x128xf32, #tpu.memory_space<vmem>>, vector<16x128xf32>
    tpu.vector_store %arg8[%c0_14, %c0_15], %27 {strides = array<i32>} : memref<16x128xf32, #tpu.memory_space<vmem>>, vector<16x128xf32>,
    %c0_i32_16 = arith.constant 0 : i32
    %29 = arith.cmpi eq, %arg1, %c0_i32_16 : i32
    %30 = arith.extui %29 : i1 to i32
    %c0_i32_17 = arith.constant 0 : i32
    %31 = arith.cmpi ne, %30, %c0_i32_17 : i32
    scf.if %31 {
      %c0_18 = arith.constant 0 : index
      %c0_19 = arith.constant 0 : index
      %32 = vector.load %arg8[%c0_18, %c0_19] : memref<16x128xf32, #tpu.memory_space<vmem>>, vector<16x128xf32>
      %c0_20 = arith.constant 0 : index
      %c0_21 = arith.constant 0 : index
      %33 = vector.load %arg7[%c0_20, %c0_21] : memref<16x128xf32, #tpu.memory_space<vmem>>, vector<16x128xf32>
      tpu.vector_store %arg7[%c0_20, %c0_21], %32 {strides = array<i32>} : memref<16x128xf32, #tpu.memory_space<vmem>>, vector<16x128xf32>,
    } else {
    }
    return
  }
  func.func @transform_0(%arg0: i32, %arg1: i32) -> (i32, i32) {
    %c0_i32 = arith.constant 0 : i32
    %c0_i32_0 = arith.constant 0 : i32
    return %arg0, %c0_i32 : i32, i32
  }
  func.func @transform_1(%arg0: i32, %arg1: i32) -> (i32, i32) {
    %c0_i32 = arith.constant 0 : i32
    %c0_i32_0 = arith.constant 0 : i32
    return %c0_i32, %arg1 : i32, i32
  }
  func.func @transform_2(%arg0: i32, %arg1: i32) -> (i32, i32) {
    %c0_i32 = arith.constant 0 : i32
    %c0_i32_0 = arith.constant 0 : i32
    %c0_i32_1 = arith.constant 0 : i32
    return %c0_i32, %c0_i32_0 : i32, i32
  }
  func.func @transform_3(%arg0: i32, %arg1: i32) -> (i32, i32) {
    %c0_i32 = arith.constant 0 : i32
    %c0_i32_0 = arith.constant 0 : i32
    return %arg1, %c0_i32 : i32, i32
  }
  func.func @transform_4(%arg0: i32, %arg1: i32) -> (i32, i32) {
    %c0_i32 = arith.constant 0 : i32
    %c0_i32_0 = arith.constant 0 : i32
    %c0_i32_1 = arith.constant 0 : i32
    return %c0_i32, %c0_i32_0 : i32, i32
  }
  func.func @transform_5(%arg0: i32, %arg1: i32) -> (i32, i32) {
    %c0_i32 = arith.constant 0 : i32
    %c0_i32_0 = arith.constant 0 : i32
    return %arg0, %c0_i32 : i32, i32
  }
}

</mosaic_0001>

<bundles_post_ra>
// kernel: _feed_forward_impl.1
= control target key start
LH: loop header
LB: loop body
LE: loop exit
PB: predicated region body
PF: predicated region fallthrough
CT: control target
= control target key end

     0   :  { %s334_s1 = inlined_call_operand.vmem [shape: f32[128,128], index: 1, kind: input, shape index: {}]   ;;  %s335_s3 = inlined_call_operand.vmem [shape: f32[128,128], index: 3, kind: input, shape index: {}]   ;;  %s336_s2 = inlined_call_operand.vmem [shape: f32[1,128], index: 2, kind: input, shape index: {}]   ;;  %s337_s0 = inlined_call_operand.vmem [shape: f32[16,128], index: 0, kind: input, shape index: {}]   ;;  %s338_s4 = inlined_call_operand.vmem [shape: f32[1,128], index: 4, kind: input, shape index: {}]   ;;  %s339_s5 = inlined_call_operand.vmem [shape: f32[16,128], index: 5, kind: output, shape index: {}]  }
   0x1   :  { %v47_v0 = vld [vmem:[%s334_s1 + $0x78] sm:$0xff]  ;;  %v46_v1 = vld [vmem:[%s334_s1 + $0x70] sm:$0xff]  ;;  %v45_v2 = vld [vmem:[%s334_s1 + $0x68] sm:$0xff] }
   0x2   :  { %56 = vmatpush.msra.mxu0 %v47_v0  ;;  %152 = vmatpush.msra.mxu2 %v47_v0  ;;  %v44_v3 = vld [vmem:[%s334_s1 + $0x60] sm:$0xff]  ;;  %v43_v4 = vld [vmem:[%s334_s1 + $0x58] sm:$0xff]  ;;  %v111_v6 = vld [vmem:[%s335_s3 + $0x70] sm:$0xff] }
   0x3   :  { %v112_v5 = vld [vmem:[%s335_s3 + $0x78] sm:$0xff]  ;;  %v42_v7 = vld [vmem:[%s334_s1 + $0x50] sm:$0xff]  ;;  %v110_v8 = vld [vmem:[%s335_s3 + $0x68] sm:$0xff] }
   0x4   :  { %57 = vmatpush.msra.mxu0 %v46_v1  ;;  %153 = vmatpush.msra.mxu2 %v46_v1  ;;  %v41_v9 = vld [vmem:[%s334_s1 + $0x48] sm:$0xff]  ;;  %v109_v10 = vld [vmem:[%s335_s3 + $0x60] sm:$0xff]  ;;  %v108_v12 = vld [vmem:[%s335_s3 + $0x58] sm:$0xff] }
   0x5   :  { %113 = vmatpush.msra.mxu1 %v112_v5  ;;  %168 = vmatpush.msra.mxu3 %v112_v5  ;;  %v40_v11 = vld [vmem:[%s334_s1 + $0x40] sm:$0xff]  ;;  %v39_v13 = vld [vmem:[%s334_s1 + $0x38] sm:$0xff]  ;;  %v38_v14 = vld [vmem:[%s334_s1 + $0x30] sm:$0xff] }
   0x6   :  { %58 = vmatpush.msra.mxu0 %v45_v2  ;;  %154 = vmatpush.msra.mxu2 %v45_v2  ;;  %v37_v15 = vld [vmem:[%s334_s1 + $0x28] sm:$0xff]  ;;  %v36_v16 = vld [vmem:[%s334_s1 + $0x20] sm:$0xff]  ;;  %v35_v17 = vld [vmem:[%s334_s1 + $0x18] sm:$0xff] }
   0x7   :  { %114 = vmatpush.msra.mxu1 %v111_v6  ;;  %169 = vmatpush.msra.mxu3 %v111_v6  ;;  %v34_v18 = vld [vmem:[%s334_s1 + $0x10] sm:$0xff]  ;;  %v33_v19 = vld [vmem:[%s334_s1 + $0x8] sm:$0xff]  ;;  %v32_v20 = vld [vmem:[%s334_s1] sm:$0xff] }
   0x8   :  { %59 = vmatpush.msra.mxu0 %v44_v3  ;;  %155 = vmatpush.msra.mxu2 %v44_v3  ;;  %v30_v21 = vld [vmem:[%s337_s0] sm:$0xff]  ;;  %v31_v22 = vld [vmem:[%s337_s0 + $0x8] sm:$0xff]  ;;  %v107_v23 = vld [vmem:[%s335_s3 + $0x50] sm:$0xff] }
   0x9   :  { %115 = vmatpush.msra.mxu1 %v110_v8  ;;  %170 = vmatpush.msra.mxu3 %v110_v8  ;;  %v106_v24 = vld [vmem:[%s335_s3 + $0x48] sm:$0xff]  ;;  %v105_v25 = vld [vmem:[%s335_s3 + $0x40] sm:$0xff]  ;;  %v104_v26 = vld [vmem:[%s335_s3 + $0x38] sm:$0xff] }
   0xa   :  { %60 = vmatpush.msra.mxu0 %v43_v4  ;;  %156 = vmatpush.msra.mxu2 %v43_v4  ;;  %v103_v27 = vld [vmem:[%s335_s3 + $0x30] sm:$0xff]  ;;  %v102_v28 = vld [vmem:[%s335_s3 + $0x28] sm:$0xff]  ;;  %v101_v29 = vld [vmem:[%s335_s3 + $0x20] sm:$0xff] }
   0xb   :  { %116 = vmatpush.msra.mxu1 %v109_v10  ;;  %171 = vmatpush.msra.mxu3 %v109_v10  ;;  %v100_v30 = vld [vmem:[%s335_s3 + $0x18] sm:$0xff]  ;;  %v99_v31 = vld [vmem:[%s335_s3 + $0x10] sm:$0xff]  ;;  %v98_v32 = vld [vmem:[%s335_s3 + $0x8] sm:$0xff] }
   0xc   :  { %61 = vmatpush.msra.mxu0 %v42_v7  ;;  %157 = vmatpush.msra.mxu2 %v42_v7  ;;  %v97_v33 = vld [vmem:[%s335_s3] sm:$0xff] }
   0xd   :  { %117 = vmatpush.msra.mxu1 %v108_v12  ;;  %172 = vmatpush.msra.mxu3 %v108_v12  ;;  %v184_v34 = vld [vmem:[%s336_s2] ss:$0 sm:$0xff] }
   0xe   :  { %62 = vmatpush.msra.mxu0 %v41_v9  ;;  %158 = vmatpush.msra.mxu2 %v41_v9  ;;  %v185_v55 = vld [vmem:[%s338_s4] ss:$0 sm:$0xff] }
   0xf   :  { %118 = vmatpush.msra.mxu1 %v107_v23  ;;  %173 = vmatpush.msra.mxu3 %v107_v23 }
  0x10   :  { %63 = vmatpush.msra.mxu0 %v40_v11  ;;  %159 = vmatpush.msra.mxu2 %v40_v11 }
  0x11   :  { %119 = vmatpush.msra.mxu1 %v106_v24  ;;  %174 = vmatpush.msra.mxu3 %v106_v24 }
  0x12   :  { %64 = vmatpush.msra.mxu0 %v39_v13  ;;  %160 = vmatpush.msra.mxu2 %v39_v13 }
  0x13   :  { %120 = vmatpush.msra.mxu1 %v105_v25  ;;  %175 = vmatpush.msra.mxu3 %v105_v25 }
  0x14   :  { %65 = vmatpush.msra.mxu0 %v38_v14  ;;  %161 = vmatpush.msra.mxu2 %v38_v14 }
  0x15   :  { %121 = vmatpush.msra.mxu1 %v104_v26  ;;  %176 = vmatpush.msra.mxu3 %v104_v26 }
  0x16   :  { %66 = vmatpush.msra.mxu0 %v37_v15  ;;  %162 = vmatpush.msra.mxu2 %v37_v15 }
  0x17   :  { %122 = vmatpush.msra.mxu1 %v103_v27  ;;  %177 = vmatpush.msra.mxu3 %v103_v27 }
  0x18   :  { %67 = vmatpush.msra.mxu0 %v36_v16  ;;  %163 = vmatpush.msra.mxu2 %v36_v16 }
  0x19   :  { %123 = vmatpush.msra.mxu1 %v102_v28  ;;  %178 = vmatpush.msra.mxu3 %v102_v28 }
  0x1a   :  { %68 = vmatpush.msra.mxu0 %v35_v17  ;;  %164 = vmatpush.msra.mxu2 %v35_v17 }
  0x1b   :  { %124 = vmatpush.msra.mxu1 %v101_v29  ;;  %179 = vmatpush.msra.mxu3 %v101_v29 }
  0x1c   :  { %69 = vmatpush.msra.mxu0 %v34_v18  ;;  %165 = vmatpush.msra.mxu2 %v34_v18 }
  0x1d   :  { %125 = vmatpush.msra.mxu1 %v100_v30  ;;  %180 = vmatpush.msra.mxu3 %v100_v30 }
  0x1e   :  { %70 = vmatpush.msra.mxu0 %v33_v19  ;;  %166 = vmatpush.msra.mxu2 %v33_v19 }
  0x1f   :  { %126 = vmatpush.msra.mxu1 %v99_v31  ;;  %181 = vmatpush.msra.mxu3 %v99_v31 }
  0x20   :  { %71 = vmatpush.msra.mxu0 %v32_v20  ;;  %167 = vmatpush.msra.mxu2 %v32_v20 }
  0x21   :  { %72 = vmatmul.f32.vlgmr.msra.gmra.mxu0 %v30_v21  ;;  %75 = vmatmul.f32.vlgmr.msra.gmra.mxu2 %v31_v22 }
  0x22   :  { %127 = vmatpush.msra.mxu1 %v98_v32  ;;  %182 = vmatpush.msra.mxu3 %v98_v32 }
  0x24   :  { %128 = vmatpush.msra.mxu1 %v97_v33  ;;  %183 = vmatpush.msra.mxu3 %v97_v33 }
  0x9e   :  { %v73_v35 = vpop.f32.mrf.mxu0 }
  0x9f   :  { %v74_v36 = vadd.f32 %v184_v34, %v73_v35 }
  0xa1   :  { %v79_v37 = vmul.f32 %v74_v36, %v74_v36  ;;  %v89_v48 = vmul.f32 0.5, %v74_v36 }
  0xa3   :  { %v81_v38 = vmul.f32 0.035677407, %v79_v37 }
  0xa4   :  { %v76_v39 = vpop.f32.mrf.mxu2 }
  0xa5   :  { %v83_v40 = vadd.f32 0.7978846, %v81_v38  ;;  %v77_v41 = vadd.f32 %v184_v34, %v76_v39 }
  0xa7   :  { %v85_v42 = vmul.f32 %v83_v40, %v74_v36  ;;  %v80_v43 = vmul.f32 %v77_v41, %v77_v41  ;;  %v90_v52 = vmul.f32 0.5, %v77_v41 }
  0xa9   :  { %v82_v44 = vmul.f32 0.035677407, %v80_v43  ;;  %186 = vtanh.f32 %v85_v42 }
  0xab   :  { %v84_v45 = vadd.f32 0.7978846, %v82_v44 }
  0xad   :  { %v86_v46 = vmul.f32 %v84_v45, %v77_v41 }
  0xaf   :  { %v187_v47 = vpop.eup %186  ;;  %188 = vtanh.f32 %v86_v46 }
  0xb0   :  { %v91_v49 = vadd.f32 1.0, %v187_v47 }
  0xb2   :  { %v93_v50 = vmul.f32 %v91_v49, %v89_v48 }
  0xb4   :  { %129 = vmatmul.f32.vlgmr.msra.gmra.mxu1 %v93_v50 }
  0xb5   :  { %v189_v51 = vpop.eup %188 }
  0xb6   :  { %v92_v53 = vadd.f32 1.0, %v189_v51 }
  0xb8   :  { %v94_v54 = vmul.f32 %v92_v53, %v90_v52 }
  0xba   :  { %132 = vmatmul.f32.vlgmr.msra.gmra.mxu3 %v94_v54 }
 0x131   :  { %v130_v56 = vpop.f32.mrf.mxu1 }
 0x132   :  { %v136_v57 = vadd.f32 %v185_v55, %v130_v56 }
 0x134   :  { %145 = vst [vmem:[%s339_s5] sm:$0xff] %v136_v57 }
 0x13d   :  { %v133_v58 = vpop.f32.mrf.mxu3 }
 0x13e   :  { %v137_v59 = vadd.f32 %v185_v55, %v133_v58 }
 0x140   :  { %146 = vst [vmem:[%s339_s5 + $0x8] sm:$0xff] %v137_v59 }

</bundles_post_ra>
